<compile_context>
chip_gen: v7x
topology: tpu7x:2x2x1
jax: 0.10.0
libtpu: 0.0.40
codegen_flags: <defaults>
</compile_context>

<pallas_src>
import jax
import jax.numpy as jnp
from jax.experimental import pallas as pl
from jax.experimental.pallas import tpu as pltpu

D1 = 300   # dense1 out_features
D2 = 100   # dense2 out_features

_LANE = 128
_VMEM_BUDGET = 48 * 1024 * 1024   # safe on v7x (64 MiB/TC physical); fine on v5e/v6e


def _round_up(x, m):
    return (x + m - 1) // m * m


def _cdiv(a, b):
    return -(-a // b)


def _head_kernel(x_ref, w1_ref, b1_ref, w2_ref, b2_ref, w3_ref, b3_ref,
                 x1_ref, x2_ref, x3_ref):
    """One batch tile: three chained linears, bf16 MXU with f32 accumulate."""
    # Dropout (p=0.3) is identity at inference time.
    # TODO(synk): training-mode dropout mask not implemented (eval-only head).
    tb = x_ref.shape[0]

    # Resident weights/biases: load once per tile, hoisted out of the row loop.
    w1 = w1_ref[...]
    w2 = w2_ref[...]
    w3 = w3_ref[...]
    b1 = b1_ref[...]
    b2 = b2_ref[...]
    b3 = b3_ref[...]

    # Split the tile into row sub-tiles so the MXU work of sub-tile i can
    # overlap the EUP tanh of sub-tile i-1 (finer dependency chains).
    # Sub-tile row counts stay multiples of 16 (sublane-safe for f32/bf16).
    if tb % 64 == 0:
        n_sub = 4
    elif tb % 32 == 0:
        n_sub = 2
    else:
        n_sub = 1
    sub = tb // n_sub

    for s in range(n_sub):                       # static unroll
        r = s * sub
        x = x_ref[pl.ds(r, sub), :].astype(jnp.bfloat16)

        h1 = jnp.tanh(
            jnp.dot(x, w1, preferred_element_type=jnp.float32) + b1)
        x1_ref[pl.ds(r, sub), :] = h1.astype(x1_ref.dtype)

        h2 = jnp.tanh(
            jnp.dot(h1.astype(jnp.bfloat16), w2,
                    preferred_element_type=jnp.float32) + b2)
        x2_ref[pl.ds(r, sub), :] = h2.astype(x2_ref.dtype)

        h3 = (jnp.dot(h2.astype(jnp.bfloat16), w3,
                      preferred_element_type=jnp.float32) + b3)
        x3_ref[pl.ds(r, sub), :] = h3.astype(x3_ref.dtype)


def prepare_head_params(w1, b1, w2, b2, w3, b3, *, weight_dtype=jnp.bfloat16):
    """One-time (init) padding + cast of the head parameters.

    Weights come in as [in, out].  Feature dims are zero-padded to 128-lane
    multiples (exact math: padded rows/cols are zero), weights are cast to
    bf16 for the MXU, biases stay f32 for the f32 bias add.
    """
    w1 = jnp.asarray(w1, jnp.float32)
    w2 = jnp.asarray(w2, jnp.float32)
    w3 = jnp.asarray(w3, jnp.float32)
    H = w1.shape[0]
    NL = w3.shape[1]
    D1P = _round_up(D1, _LANE)          # 384
    D2P = _round_up(D2, _LANE)          # 128
    NLP = _round_up(NL, _LANE)          # e.g. 4 -> 128

    def padw(w, rows, cols):
        r, c = w.shape
        return jnp.pad(w, ((0, rows - r), (0, cols - c))).astype(weight_dtype)

    def padb(b, cols):
        b = jnp.asarray(b, jnp.float32).reshape(1, -1)
        return jnp.pad(b, ((0, 0), (0, cols - b.shape[1])))      # f32

    return {
        "w1": padw(w1, H, D1P), "b1": padb(b1, D1P),
        "w2": padw(w2, D1P, D2P), "b2": padb(b2, D2P),
        "w3": padw(w3, D2P, NLP), "b3": padb(b3, NLP),
        "hidden_size": H, "num_labels": NL,
    }


def wav2vec2_classification_head(features, params, *, block_b=2048,
                                 out_dtype=jnp.float32, trim=True):
    """features: [B, hidden_size]; params from prepare_head_params().

    trim=True returns module-shaped outputs ([B,300], [B,100], [B,num_labels]).
    trim=False returns the row/lane-padded kernel buffers directly, saving one
    HBM read+write per output when the consumer can handle the padding.
    """
    features = jnp.asarray(features)
    B, H = features.shape
    assert H == params["hidden_size"]
    NL = params["num_labels"]
    D1P = params["w1"].shape[1]
    D2P = params["w2"].shape[1]
    NLP = params["w3"].shape[1]

    out_itemsize = jnp.dtype(out_dtype).itemsize
    in_itemsize = jnp.dtype(features.dtype).itemsize
    sublane = 8 if min(out_itemsize, in_itemsize) >= 4 else 16

    # ---- batch tile sizing against the VMEM budget -------------------------
    # Resident weights/biases are double-buffered by the pipeliner; account
    # for that explicitly in the budget.
    w_bytes = 2 * sum(int(params[k].size) * jnp.dtype(params[k].dtype).itemsize
                      for k in ("w1", "b1", "w2", "b2", "w3", "b3"))
    row_bytes = 2 * (in_itemsize * H + out_itemsize * (D1P + D2P + NLP))
    avail = _VMEM_BUDGET - w_bytes - (4 << 20)          # headroom for scratch
    tb_cap = max(sublane, (avail // row_bytes) // sublane * sublane)
    tb_max = max(sublane, min(block_b, tb_cap))

    # Balanced tiles: minimize padded rows (B_pad - B).
    n_tiles = _cdiv(B, tb_max)
    if n_tiles == 1 and B > sublane:
        n_tiles = 2             # v7x: give both TensorCores a grid step
    TB = _round_up(_cdiv(B, n_tiles), sublane)
    B_pad = TB * n_tiles

    xp = features if B_pad == B else jnp.pad(features, ((0, B_pad - B), (0, 0)))

    vmem_limit = int(min(_VMEM_BUDGET,
                         max(32 * 1024 * 1024,
                             w_bytes + TB * row_bytes + (8 << 20))))

    resident = lambda shape: pl.BlockSpec(shape, lambda i: (0, 0))

    grid_spec = pltpu.PrefetchScalarGridSpec(
        num_scalar_prefetch=0,
        grid=(n_tiles,),
        in_specs=[
            pl.BlockSpec((TB, H), lambda i: (i, 0)),     # x tile: pipelined
            resident((H, D1P)), resident((1, D1P)),      # weights: VMEM-resident
            resident((D1P, D2P)), resident((1, D2P)),
            resident((D2P, NLP)), resident((1, NLP)),
        ],
        out_specs=[
            pl.BlockSpec((TB, D1P), lambda i: (i, 0)),
            pl.BlockSpec((TB, D2P), lambda i: (i, 0)),
            pl.BlockSpec((TB, NLP), lambda i: (i, 0)),
        ],
    )

    out_shape = (
        jax.ShapeDtypeStruct((B_pad, D1P), out_dtype),
        jax.ShapeDtypeStruct((B_pad, D2P), out_dtype),
        jax.ShapeDtypeStruct((B_pad, NLP), out_dtype),
    )

    o1, o2, o3 = pl.pallas_call(
        _head_kernel,
        grid_spec=grid_spec,
        out_shape=out_shape,
        compiler_params=pltpu.CompilerParams(
            dimension_semantics=("parallel",),   # batch axis: megacore-shardable
            vmem_limit_bytes=vmem_limit,
        ),
    )(xp, params["w1"], params["b1"], params["w2"], params["b2"],
      params["w3"], params["b3"])

    if not trim:
        return o1, o2, o3
    return o1[:B, :D1], o2[:B, :D2], o3[:B, :NL]


def _init_linear(key, fan_in, fan_out):
    # Mimics torch.nn.Linear default init: U(-1/sqrt(fan_in), 1/sqrt(fan_in)),
    # stored as [in, out] for the kernel.
    kw, kb = jax.random.split(key)
    bound = 1.0 / jnp.sqrt(jnp.float32(fan_in))
    w = jax.random.uniform(kw, (fan_in, fan_out), jnp.float32, -bound, bound)
    b = jax.random.uniform(kb, (1, fan_out), jnp.float32, -bound, bound)
    return w, b


if __name__ == "__main__":
    key = jax.random.PRNGKey(0)
    k_feat, k1, k2, k3 = jax.random.split(key, 4)

    B = 2            # batch
    HIDDEN = 32      # config.hidden_size (small synthetic)
    NUM_LABELS = 4   # config.num_labels

    features = jax.random.normal(k_feat, (B, HIDDEN), jnp.float32)

    w1, b1 = _init_linear(k1, HIDDEN, D1)
    w2, b2 = _init_linear(k2, D1, D2)
    w3, b3 = _init_linear(k3, D2, NUM_LABELS)

    # One-time parameter preparation (pad + bf16 cast) — hoisted out of the call.
    params = prepare_head_params(w1, b1, w2, b2, w3, b3)

    x1, x2, x3 = wav2vec2_classification_head(features, params)
    jax.block_until_ready((x1, x2, x3))

    # Pure-JAX f32 reference (eval-mode forward).  bf16 MXU -> loose tolerance.
    r1 = jnp.tanh(features @ w1 + b1)
    r2 = jnp.tanh(r1 @ w2 + b2)
    r3 = r2 @ w3 + b3
    assert x1.shape == (B, D1) and x2.shape == (B, D2) and x3.shape == (B, NUM_LABELS)
    assert jnp.allclose(x1, r1, atol=5e-2, rtol=5e-2)
    assert jnp.allclose(x2, r2, atol=5e-2, rtol=5e-2)
    assert jnp.allclose(x3, r3, atol=5e-2, rtol=5e-2)

    print("KERNEL_OK")
</pallas_src>

<mosaic_0001>
module attributes {stable_mosaic.version = 11 : i64} {
  func.func @_head_kernel(%arg0: i32, %arg1: memref<8x32xf32, #tpu.memory_space<vmem>>, %arg2: memref<32x384xbf16, #tpu.memory_space<vmem>>, %arg3: memref<1x384xf32, #tpu.memory_space<vmem>>, %arg4: memref<384x128xbf16, #tpu.memory_space<vmem>>, %arg5: memref<1x128xf32, #tpu.memory_space<vmem>>, %arg6: memref<128x128xbf16, #tpu.memory_space<vmem>>, %arg7: memref<1x128xf32, #tpu.memory_space<vmem>>, %arg8: memref<8x384xf32, #tpu.memory_space<vmem>>, %arg9: memref<8x128xf32, #tpu.memory_space<vmem>>, %arg10: memref<8x128xf32, #tpu.memory_space<vmem>>) attributes {dimension_semantics = [#tpu.dimension_semantics<parallel>], iteration_bounds = array<i64: 1>, scalar_prefetch = 0 : i64, scratch_operands = 0 : i64, tpu.core_type = #tpu.core_type<tc>, window_params = [{transform_indices = @transform_0, window_bounds = array<i64: 8, 32>}, {pipeline_mode = #tpu.pipeline_mode<synchronous>, transform_indices = @transform_1, window_bounds = array<i64: 32, 384>}, {pipeline_mode = #tpu.pipeline_mode<synchronous>, transform_indices = @transform_2, window_bounds = array<i64: 1, 384>}, {pipeline_mode = #tpu.pipeline_mode<synchronous>, transform_indices = @transform_3, window_bounds = array<i64: 384, 128>}, {pipeline_mode = #tpu.pipeline_mode<synchronous>, transform_indices = @transform_4, window_bounds = array<i64: 1, 128>}, {pipeline_mode = #tpu.pipeline_mode<synchronous>, transform_indices = @transform_5, window_bounds = array<i64: 128, 128>}, {pipeline_mode = #tpu.pipeline_mode<synchronous>, transform_indices = @transform_6, window_bounds = array<i64: 1, 128>}, {transform_indices = @transform_7, window_bounds = array<i64: 8, 384>}, {transform_indices = @transform_8, window_bounds = array<i64: 8, 128>}, {transform_indices = @transform_9, window_bounds = array<i64: 8, 128>}]} {
    %c0 = arith.constant 0 : index
    %c0_0 = arith.constant 0 : index
    %0 = vector.load %arg2[%c0, %c0_0] : memref<32x384xbf16, #tpu.memory_space<vmem>>, vector<32x384xbf16>
    %c0_1 = arith.constant 0 : index
    %c0_2 = arith.constant 0 : index
    %1 = vector.load %arg4[%c0_1, %c0_2] : memref<384x128xbf16, #tpu.memory_space<vmem>>, vector<384x128xbf16>
    %c0_3 = arith.constant 0 : index
    %c0_4 = arith.constant 0 : index
    %2 = vector.load %arg6[%c0_3, %c0_4] : memref<128x128xbf16, #tpu.memory_space<vmem>>, vector<128x128xbf16>
    %c0_5 = arith.constant 0 : index
    %c0_6 = arith.constant 0 : index
    %3 = vector.load %arg3[%c0_5, %c0_6] : memref<1x384xf32, #tpu.memory_space<vmem>>, vector<1x384xf32>
    %c0_7 = arith.constant 0 : index
    %c0_8 = arith.constant 0 : index
    %4 = vector.load %arg5[%c0_7, %c0_8] : memref<1x128xf32, #tpu.memory_space<vmem>>, vector<1x128xf32>
    %c0_9 = arith.constant 0 : index
    %c0_10 = arith.constant 0 : index
    %5 = vector.load %arg7[%c0_9, %c0_10] : memref<1x128xf32, #tpu.memory_space<vmem>>, vector<1x128xf32>
    %c0_11 = arith.constant 0 : index
    %c0_12 = arith.constant 0 : index
    %6 = vector.load %arg1[%c0_11, %c0_12] : memref<8x32xf32, #tpu.memory_space<vmem>>, vector<8x32xf32>
    %7 = arith.truncf %6 : vector<8x32xf32> to vector<8x32xbf16>
    %cst = arith.constant dense<0.000000e+00> : vector<8x384xf32>
    %8 = tpu.matmul %7, %0, %cst {dimension_numbers = #tpu.dot_dimension_numbers<[1], [0], [0], [1], [0, 0, 1, 1], [], []>} : vector<8x32xbf16>, vector<32x384xbf16>, vector<8x384xf32> -> vector<8x384xf32>
    %9 = vector.broadcast %3 : vector<1x384xf32> to vector<8x384xf32>
    %10 = arith.addf %8, %9 : vector<8x384xf32>
    %11 = math.tanh %10 : vector<8x384xf32>
    %c0_13 = arith.constant 0 : index
    %c0_14 = arith.constant 0 : index
    %12 = vector.load %arg8[%c0_13, %c0_14] : memref<8x384xf32, #tpu.memory_space<vmem>>, vector<8x384xf32>
    tpu.vector_store %arg8[%c0_13, %c0_14], %11 {strides = array<i32>} : memref<8x384xf32, #tpu.memory_space<vmem>>, vector<8x384xf32>,
    %13 = arith.truncf %11 : vector<8x384xf32> to vector<8x384xbf16>
    %cst_15 = arith.constant dense<0.000000e+00> : vector<8x128xf32>
    %14 = tpu.matmul %13, %1, %cst_15 {dimension_numbers = #tpu.dot_dimension_numbers<[1], [0], [0], [1], [0, 0, 1, 1], [], []>} : vector<8x384xbf16>, vector<384x128xbf16>, vector<8x128xf32> -> vector<8x128xf32>
    %15 = vector.broadcast %4 : vector<1x128xf32> to vector<8x128xf32>
    %16 = arith.addf %14, %15 : vector<8x128xf32>
    %17 = math.tanh %16 : vector<8x128xf32>
    %c0_16 = arith.constant 0 : index
    %c0_17 = arith.constant 0 : index
    %18 = vector.load %arg9[%c0_16, %c0_17] : memref<8x128xf32, #tpu.memory_space<vmem>>, vector<8x128xf32>
    tpu.vector_store %arg9[%c0_16, %c0_17], %17 {strides = array<i32>} : memref<8x128xf32, #tpu.memory_space<vmem>>, vector<8x128xf32>,
    %19 = arith.truncf %17 : vector<8x128xf32> to vector<8x128xbf16>
    %cst_18 = arith.constant dense<0.000000e+00> : vector<8x128xf32>
    %20 = tpu.matmul %19, %2, %cst_18 {dimension_numbers = #tpu.dot_dimension_numbers<[1], [0], [0], [1], [0, 0, 1, 1], [], []>} : vector<8x128xbf16>, vector<128x128xbf16>, vector<8x128xf32> -> vector<8x128xf32>
    %21 = vector.broadcast %5 : vector<1x128xf32> to vector<8x128xf32>
    %22 = arith.addf %20, %21 : vector<8x128xf32>
    %c0_19 = arith.constant 0 : index
    %c0_20 = arith.constant 0 : index
    %23 = vector.load %arg10[%c0_19, %c0_20] : memref<8x128xf32, #tpu.memory_space<vmem>>, vector<8x128xf32>
    tpu.vector_store %arg10[%c0_19, %c0_20], %22 {strides = array<i32>} : memref<8x128xf32, #tpu.memory_space<vmem>>, vector<8x128xf32>,
    return
  }
  func.func @transform_0(%arg0: i32) -> (i32, i32) {
    %c0_i32 = arith.constant 0 : i32
    %c0_i32_0 = arith.constant 0 : i32
    return %arg0, %c0_i32 : i32, i32
  }
  func.func @transform_1(%arg0: i32) -> (i32, i32) {
    %c0_i32 = arith.constant 0 : i32
    %c0_i32_0 = arith.constant 0 : i32
    %c0_i32_1 = arith.constant 0 : i32
    return %c0_i32, %c0_i32_0 : i32, i32
  }
  func.func @transform_2(%arg0: i32) -> (i32, i32) {
    %c0_i32 = arith.constant 0 : i32
    %c0_i32_0 = arith.constant 0 : i32
    %c0_i32_1 = arith.constant 0 : i32
    return %c0_i32, %c0_i32_0 : i32, i32
  }
  func.func @transform_3(%arg0: i32) -> (i32, i32) {
    %c0_i32 = arith.constant 0 : i32
    %c0_i32_0 = arith.constant 0 : i32
    %c0_i32_1 = arith.constant 0 : i32
    return %c0_i32, %c0_i32_0 : i32, i32
  }
  func.func @transform_4(%arg0: i32) -> (i32, i32) {
    %c0_i32 = arith.constant 0 : i32
    %c0_i32_0 = arith.constant 0 : i32
    %c0_i32_1 = arith.constant 0 : i32
    return %c0_i32, %c0_i32_0 : i32, i32
  }
  func.func @transform_5(%arg0: i32) -> (i32, i32) {
    %c0_i32 = arith.constant 0 : i32
    %c0_i32_0 = arith.constant 0 : i32
    %c0_i32_1 = arith.constant 0 : i32
    return %c0_i32, %c0_i32_0 : i32, i32
  }
  func.func @transform_6(%arg0: i32) -> (i32, i32) {
    %c0_i32 = arith.constant 0 : i32
    %c0_i32_0 = arith.constant 0 : i32
    %c0_i32_1 = arith.constant 0 : i32
    return %c0_i32, %c0_i32_0 : i32, i32
  }
  func.func @transform_7(%arg0: i32) -> (i32, i32) {
    %c0_i32 = arith.constant 0 : i32
    %c0_i32_0 = arith.constant 0 : i32
    return %arg0, %c0_i32 : i32, i32
  }
  func.func @transform_8(%arg0: i32) -> (i32, i32) {
    %c0_i32 = arith.constant 0 : i32
    %c0_i32_0 = arith.constant 0 : i32
    return %arg0, %c0_i32 : i32, i32
  }
  func.func @transform_9(%arg0: i32) -> (i32, i32) {
    %c0_i32 = arith.constant 0 : i32
    %c0_i32_0 = arith.constant 0 : i32
    return %arg0, %c0_i32 : i32, i32
  }
}

</mosaic_0001>

<bundles_post_ra>
// kernel: tpu_custom_call.1
= control target key start
LH: loop header
LB: loop body
LE: loop exit
PB: predicated region body
PF: predicated region fallthrough
CT: control target
= control target key end

     0   :  { %15 = vsyncpa [#allocation3], 0  ;;  %s1218_s0 = inlined_call_operand.hbm [shape: f32[8,32], index: 0, kind: input, shape index: {}]   ;;  %s1219_s1 = inlined_call_operand.hbm [shape: bf16[32,384], index: 1, kind: input, shape index: {}]   ;;  %s1220_s2 = inlined_call_operand.vmem [shape: f32[1,384], index: 2, kind: input, shape index: {}]   ;;  %s1221_s3 = inlined_call_operand.hbm [shape: bf16[384,128], index: 3, kind: input, shape index: {}]   ;;  %s1222_s4 = inlined_call_operand.vmem [shape: f32[1,128], index: 4, kind: input, shape index: {}]   ;;  %s1223_s5 = inlined_call_operand.hbm [shape: bf16[128,128], index: 5, kind: input, shape index: {}]   ;;  %s1224_s6 = inlined_call_operand.vmem [shape: f32[1,128], index: 6, kind: input, shape index: {}]   ;;  %s1225_s7 = inlined_call_operand.hbm [shape: f32[8,384], index: 7, kind: output, shape index: {0}]   ;;  %s1226_s8 = inlined_call_operand.hbm [shape: f32[8,128], index: 8, kind: output, shape index: {1}]   ;;  %s1227_s9 = inlined_call_operand.hbm [shape: f32[8,128], index: 9, kind: output, shape index: {2}]  }
   0x1   :  { %16 = vsyncpa [#allocation6], 0 }
   0x2   :  { %17 = vsyncpa [#allocation9], 0 }
   0x3   :  { %18 = vsyncpa [#allocation4], 0 }
   0x4   :  { %19 = vsyncpa [#allocation12], 0  ;;  %s1035_s30 = smov [#allocation5]   ;;  %s871_s13 = scalar_lea.hbm %s1219_s1, 768 }
   0x5   :  { %s35_s10 = sshll.u32 %s1035_s30, 4  ;;  %p872_p0 = scmp.ne.s32.totalorder %s1219_s1, %s871_s13  ;;  %s36_s10 = int_to_ptr.vmem [resolvable:$true] %s35_s10 }
   0x6   :  { %p875_p1 = scmp.lt.u32.totalorder %s871_s13, %s1219_s1 }
   0x8   :  { %p877_p2 = pnand %p875_p1, %p872_p0 }
   0xa   :  { %880 = shalt.err (!%p877_p2)
}
   0xb   :  { %s881_s18 = scalar_lea.vmem %s36_s10, 768  ;;  %p886_p4 = scmp.lt.s32.totalorder %s36_s10, %s36_s10 }
   0xc   :  { %p882_p3 = scmp.ne.s32.totalorder %s36_s10, %s881_s18  ;;  %p887_p5 = scmp.lt.s32.totalorder %s881_s18, %s881_s18 }
   0xe   :  { %p888_p6 = por %p887_p5, %p886_p4 }
  0x10   :  { %p889_p7 = pnand %p888_p6, %p882_p3 }
  0x12   :  { %892 = shalt.err (!%p889_p7)
}
  0x13   :  { %s1036_s19 = smov 192   ;;  %s1037_s20 = smov 12  }
  0x14   :  { %41 = dma.hbm_to_vmem [thread:$0]  %s1219_s1, 768, %s36_s10, [#allocation6], %s1036_s19, %s1036_s19, %s1037_s20  }
  0x15   :  { %s1038_s23 = smov [#allocation2]   ;;  %s1039_s25 = smov [#allocation7]  }
  0x16   :  { %s26_s24 = sshll.u32 %s1038_s23, 4  ;;  %s49_s26 = sshll.u32 %s1039_s25, 4  ;;  %s27_s24 = int_to_ptr.vmem [resolvable:$true] %s26_s24  ;;  %s50_s26 = int_to_ptr.vmem [resolvable:$true] %s49_s26 }
  0x17   :  { %s893_s29 = scalar_lea.hbm %s1218_s0, 128 }
  0x18   :  { %p894_p8 = scmp.ne.s32.totalorder %s1218_s0, %s893_s29  ;;  %p897_p9 = scmp.lt.u32.totalorder %s893_s29, %s1218_s0 }
  0x1a   :  { %p899_p10 = pnand %p897_p9, %p894_p8 }
  0x1c   :  { %902 = shalt.err (!%p899_p10)
}
  0x1d   :  { %s903_s1 = scalar_lea.vmem %s27_s24, 128  ;;  %p908_p12 = scmp.lt.s32.totalorder %s27_s24, %s27_s24 }
  0x1e   :  { %p904_p11 = scmp.ne.s32.totalorder %s27_s24, %s903_s1  ;;  %p909_p13 = scmp.lt.s32.totalorder %s903_s1, %s903_s1 }
  0x20   :  { %p910_p0 = por %p909_p13, %p908_p12 }
  0x22   :  { %p911_p1 = pnand %p910_p0, %p904_p11 }
  0x24   :  { %914 = shalt.err (!%p911_p1)
}
  0x25   :  { %29 = dma.hbm_to_vmem [thread:$0]  %s1218_s0, 128, %s27_s24, [#allocation3]  }
  0x26   :  { %s915_s17 = scalar_lea.hbm %s1221_s3, 3072 }
  0x27   :  { %p916_p2 = scmp.ne.s32.totalorder %s1221_s3, %s915_s17  ;;  %p919_p3 = scmp.lt.u32.totalorder %s915_s17, %s1221_s3 }
  0x29   :  { %p921_p4 = pnand %p919_p3, %p916_p2 }
  0x2b   :  { %924 = shalt.err (!%p921_p4)
}
  0x2c   :  { %s925_s22 = scalar_lea.vmem %s50_s26, 3072  ;;  %p930_p6 = scmp.lt.s32.totalorder %s50_s26, %s50_s26 }
  0x2d   :  { %p926_p5 = scmp.ne.s32.totalorder %s50_s26, %s925_s22  ;;  %p931_p7 = scmp.lt.s32.totalorder %s925_s22, %s925_s22 }
  0x2f   :  { %p932_p8 = por %p931_p7, %p930_p6 }
  0x31   :  { %p933_p9 = pnand %p932_p8, %p926_p5 }
  0x33   :  { %936 = shalt.err (!%p933_p9)
}
  0x34   :  { %s1040_s0 = smov 64   ;;  %s1041_s23 = smov 4  }
  0x35   :  { %55 = dma.hbm_to_vmem [thread:$0]  %s1221_s3, 3072, %s50_s26, [#allocation6], %s1040_s0, %s1040_s0, %s1041_s23  }
  0x36   :  { %s1042_s27 = smov [#allocation8]   ;;  %s937_s11 = scalar_lea.hbm %s1223_s5, 1024 }
  0x37   :  { %s63_s28 = sshll.u32 %s1042_s27, 4  ;;  %p938_p10 = scmp.ne.s32.totalorder %s1223_s5, %s937_s11  ;;  %s64_s28 = int_to_ptr.vmem [resolvable:$true] %s63_s28 }
  0x38   :  { %p941_p11 = scmp.lt.u32.totalorder %s937_s11, %s1223_s5 }
  0x3a   :  { %p943_p12 = pnand %p941_p11, %p938_p10 }
  0x3c   :  { %946 = shalt.err (!%p943_p12)
}
  0x3d   :  { %s947_s14 = scalar_lea.vmem %s64_s28, 1024  ;;  %p952_p0 = scmp.lt.s32.totalorder %s64_s28, %s64_s28 }
  0x3e   :  { %p948_p13 = scmp.ne.s32.totalorder %s64_s28, %s947_s14  ;;  %p953_p1 = scmp.lt.s32.totalorder %s947_s14, %s947_s14 }
  0x40   :  { %p954_p2 = por %p953_p1, %p952_p0 }
  0x42   :  { %p955_p3 = pnand %p954_p2, %p948_p13 }
  0x44   :  { %958 = shalt.err (!%p955_p3)
}
  0x45   :  { %69 = dma.hbm_to_vmem [thread:$0]  %s1223_s5, 1024, %s64_s28, [#allocation9], %s1040_s0, %s1040_s0, %s1041_s23  }
  0x46   :  { %1025 = dma.done.wait [#allocation3], 128  }
  0x47   :  { %1026 = vsyncadd [#allocation3], 4294967168 }
  0x48   :  { %1027 = dma.done.wait [#allocation6], 3840  }
  0x49   :  { %1028 = vsyncadd [#allocation6], 4294963456 }
  0x4a   :  { %1029 = dma.done.wait [#allocation9], 1024  }
  0x4b   :  { %1030 = vsyncadd [#allocation9], 4294966272  ;;  %v1043_v0 = vmov 0   ;;  %v823_v1 = vld [vmem:[#allocation5 + $0x4] ss:$12 sps:$4 sm:$0xff]   ;;  %v160_v5 = vld [vmem:[#allocation2] sm:$0xff]  ;;  %v163_v34 = vlaneseq }
  0x4c   :  { %246 = vmatprep.mubr.bf16.mxu1 %v1043_v0  ;;  %v825_v2 = vld [vmem:[#allocation5] ss:$12 sps:$4 sm:$0xff]   ;;  %214 = vmatprep.subr.bf16.mxu1 %v823_v1  ;;  %v826_v3 = vld [vmem:[#allocation5 + $0x1c] ss:$12 sps:$4 sm:$0xff]   ;;  %v828_v4 = vld [vmem:[#allocation5 + $0x18] ss:$12 sps:$4 sm:$0xff]   ;;  %v161_v8 = vpack.c.bf16 %v160_v5, %v160_v5 }
  0x4d   :  { %215 = vmatpush1.bf16.msra.mxu1 %v825_v2  ;;  %v829_v6 = vld [vmem:[#allocation5 + $0x8] ss:$12 sps:$4 sm:$0xff]   ;;  %vm210_vm0 = vcmask 261120   ;;  %v833_v10 = vld [vmem:[#allocation7 + $0x48] sm:$0xff]   ;;  %v1044_v11 = vmov 0.0   ;;  %v836_v13 = vld [vmem:[#allocation7 + $0x50] sm:$0xff]  }
  0x4e   :  { %216 = vmatprep.subr.bf16.mxu1 %v826_v3  ;;  %v831_v7 = vld [vmem:[#allocation7 + $0x40] sm:$0xff]   ;;  %v834_v12 = vld [vmem:[#allocation7 + $0x8] sm:$0xff]   ;;  %v830_v14 = vld [vmem:[#allocation5 + $0x20] ss:$12 sps:$4 sm:$0xff]   ;;  %vm1045_vm1 = vmmov 0   ;;  %v164_v35 = vshrl.u32 %v163_v34, 7 }
  0x4f   :  { %v832_v9 = vld [vmem:[#allocation7] sm:$0xff]   ;;  %721 = vmatprep.subr.bf16.mxu0 %v831_v7  ;;  %v837_v15 = vld [vmem:[#allocation7 + $0x10] sm:$0xff]   ;;  %v839_v16 = vld [vmem:[#allocation7 + $0x58] sm:$0xff]   ;;  %s1046_s17 = smov [#allocation11]   ;;  %s1047_s19 = smov [#allocation10]  }
  0x50   :  { %722 = vmatpush3.bf16.msra.mxu0 %v832_v9  ;;  %v835_v17 = vld [vmem:[#allocation7 + $0x80] sm:$0xff]   ;;  %v840_v18 = vld [vmem:[#allocation7 + $0x18] sm:$0xff]   ;;  %v838_v19 = vld [vmem:[#allocation7 + $0x88] sm:$0xff]   ;;  %v165_v36 = vsub.s32 0, %v164_v35  ;;  %v169_v38 = vsub.s32 1, %v164_v35  ;;  %v173_v44 = vsub.s32 2, %v164_v35 }
  0x51   :  { %217 = vmatpush1.bf16.msra.mxu1 %v828_v4  ;;  %723 = vmatprep.subr.bf16.mxu0 %v833_v10  ;;  %v841_v20 = vld [vmem:[#allocation7 + $0x90] sm:$0xff]   ;;  %v842_v21 = vld [vmem:[#allocation7 + $0x60] sm:$0xff]   ;;  %v844_v23 = vld [vmem:[#allocation7 + $0x98] sm:$0xff]   ;;  %s648_s18 = sshll.u32 %s1046_s17, 4  ;;  %s638_s20 = sshll.u32 %s1047_s19, 4  ;;  %s649_s18 = int_to_ptr.vmem [resolvable:$true] %s648_s18  ;;  %s639_s20 = int_to_ptr.vmem [resolvable:$true] %s638_s20 }
  0x52   :  { %761 = vmatprep.subr.bf16.mxu1 %v1044_v11  ;;  %v843_v22 = vld [vmem:[#allocation7 + $0x20] sm:$0xff]   ;;  %v845_v24 = vld [vmem:[#allocation7 + $0x68] sm:$0xff]   ;;  %v848_v27 = vld [vmem:[#allocation7 + $0x70] sm:$0xff]   ;;  %p964_p5 = scmp.lt.s32.totalorder %s649_s18, %s649_s18 }
  0x53   :  { %v846_v25 = vld [vmem:[#allocation7 + $0x28] sm:$0xff]   ;;  %v847_v26 = vld [vmem:[#allocation7 + $0xa0] sm:$0xff]   ;;  %v849_v28 = vld [vmem:[#allocation7 + $0x30] sm:$0xff]  }
  0x54   :  { %682 = vmatmul.mubr.msk.bf16.vlgmr.msra.gmra.mrb[0].mxu1 %vm210_vm0, %v161_v8  ;;  %724 = vmatpush3.bf16.msra.mxu0 %v834_v12  ;;  %v850_v29 = vld [vmem:[#allocation7 + $0xa8] sm:$0xff]   ;;  %v851_v30 = vld [vmem:[#allocation7 + $0x78] sm:$0xff]   ;;  %v853_v32 = vld [vmem:[#allocation7 + $0xb0] sm:$0xff]  }
  0x55   :  { %762 = vmatpush3.bf16.msra.mxu1 %v829_v6  ;;  %765 = vmatprep.mubr.msk.bf16.mxu1 %vm1045_vm1, %v1044_v11  ;;  %v852_v31 = vld [vmem:[#allocation7 + $0x38] sm:$0xff]   ;;  %v157_v37 = vld [vmem:[%s1220_s2] sm:$0x7]  ;;  %v855_v57 = vld [vmem:[#allocation8] sm:$0xff]  }
  0x56   :  { %763 = vmatprep.subr.bf16.mxu1 %v1044_v11  ;;  %725 = vmatprep.subr.bf16.mxu0 %v836_v13  ;;  %v854_v33 = vld [vmem:[#allocation7 + $0xb8] sm:$0xff]   ;;  %v166_v39 = vrot.slane %v157_v37, %v165_v36  ;;  %v170_v40 = vrot.slane %v157_v37, %v169_v38  ;;  %v174_v48 = vrot.slane %v157_v37, %v173_v44  ;;  %v856_v59 = vld [vmem:[#allocation8 + $0x8] sm:$0xff]   ;;  %v857_v62 = vld [vmem:[#allocation8 + $0x10] sm:$0xff]  }
  0x57   :  { %v858_v63 = vld [vmem:[#allocation8 + $0x18] sm:$0xff]   ;;  %v859_v0 = vld [vmem:[#allocation8 + $0x20] sm:$0xff]   ;;  %v860_v1 = vld [vmem:[#allocation8 + $0x28] sm:$0xff]  }
  0x58   :  { %726 = vmatpush3.bf16.msra.mxu0 %v837_v15  ;;  %v861_v2 = vld [vmem:[#allocation8 + $0x30] sm:$0xff]   ;;  %v862_v3 = vld [vmem:[#allocation8 + $0x38] sm:$0xff]   ;;  %v684_v6 = vld [vmem:[%s1222_s4] ss:$0 sm:$0xff]  ;;  %s959_s4 = scalar_lea.vmem %s649_s18, 128 }
  0x59   :  { %764 = vmatpush3.bf16.msra.mxu1 %v830_v14  ;;  %727 = vmatprep.subr.bf16.mxu0 %v839_v16  ;;  %p960_p4 = scmp.ne.s32.totalorder %s649_s18, %s959_s4  ;;  %p965_p6 = scmp.lt.s32.totalorder %s959_s4, %s959_s4 }
  0x5a   :  { %769 = vmatprep.subr.bf16.mxu1 %v1044_v11 }
  0x5b   :  { %p966_p7 = por %p965_p6, %p964_p5 }
  0x5c   :  { %766 = vmatmul.mubr.msk.bf16.vlgmr.msra.gmra.mrb[4].mxu1 %vm210_vm0, %v161_v8  ;;  %728 = vmatpush3.bf16.msra.mxu0 %v840_v18 }
  0x5d   :  { %770 = vmatpush3.bf16.msra.mxu1 %v835_v17  ;;  %785 = vmatprep.mubr.msk.bf16.mxu1 %vm1045_vm1, %v1044_v11  ;;  %p967_p8 = pnand %p966_p7, %p960_p4 }
  0x5e   :  { %771 = vmatprep.subr.bf16.mxu1 %v1044_v11  ;;  %729 = vmatprep.subr.bf16.mxu0 %v842_v21 }
  0x60   :  { %730 = vmatpush3.bf16.msra.mxu0 %v843_v22 }
  0x61   :  { %772 = vmatpush3.bf16.msra.mxu1 %v838_v19  ;;  %731 = vmatprep.subr.bf16.mxu0 %v845_v24 }
  0x62   :  { %773 = vmatprep.subr.bf16.mxu1 %v1044_v11 }
  0x64   :  { %732 = vmatpush3.bf16.msra.mxu0 %v846_v25 }
  0x65   :  { %774 = vmatpush3.bf16.msra.mxu1 %v841_v20  ;;  %733 = vmatprep.subr.bf16.mxu0 %v848_v27 }
  0x66   :  { %775 = vmatprep.subr.bf16.mxu1 %v1044_v11 }
  0x68   :  { %734 = vmatpush3.bf16.msra.mxu0 %v849_v28 }
  0x69   :  { %776 = vmatpush3.bf16.msra.mxu1 %v844_v23  ;;  %735 = vmatprep.subr.bf16.mxu0 %v851_v30 }
  0x6a   :  { %777 = vmatprep.subr.bf16.mxu1 %v1044_v11 }
  0x6c   :  { %736 = vmatpush3.bf16.msra.mxu0 %v852_v31 }
  0x6d   :  { %778 = vmatpush3.bf16.msra.mxu1 %v847_v26  ;;  %789 = vmatprep.subr.bf16.mxu0 %v1044_v11 }
  0x6e   :  { %779 = vmatprep.subr.bf16.mxu1 %v1044_v11 }
  0x71   :  { %780 = vmatpush3.bf16.msra.mxu1 %v850_v29 }
  0x72   :  { %781 = vmatprep.subr.bf16.mxu1 %v1044_v11 }
  0x75   :  { %782 = vmatpush3.bf16.msra.mxu1 %v853_v32 }
  0x76   :  { %783 = vmatprep.subr.bf16.mxu1 %v1044_v11 }
  0x79   :  { %784 = vmatpush3.bf16.msra.mxu1 %v854_v33 }
 0x127   :  { %v248_v41 = vpop.f32.mrb[0].mxu1 }
 0x128   :  { %v249_v42 = vadd.f32 %v248_v41, %v166_v39  ;;  %v250_v43 = vpop.f32.mrb[1].mxu1 }
 0x129   :  { %v251_v45 = vadd.f32 %v250_v43, %v170_v40  ;;  %v252_v46 = vpop.f32.mrb[2].mxu1 }
 0x12a   :  { %863 = vtanh.f32 %v249_v42  ;;  %v253_v47 = vpop.f32.mrb[3].mxu1 }
 0x12b   :  { %865 = vtanh.f32 %v251_v45 }
 0x12f   :  { %v289_v49 = vpop.f32.mrb[4].mxu1 }
 0x130   :  { %v290_v50 = vadd.f32 %v289_v49, %v174_v48  ;;  %v767_v51 = vpop.f32.mrb[5].mxu1 }
 0x131   :  { %v292_v52 = vpop.f32.mrb[6].mxu1 }
 0x132   :  { %867 = vtanh.f32 %v290_v50  ;;  %v768_v53 = vpop.f32.mrb[7].mxu1 }
 0x134   :  { %v864_v54 = vpop.eup %863 }
 0x135   :  { %v866_v55 = vpop.eup %865  ;;  %298 = vst [vmem:[#allocation10] sm:$0xff] %v864_v54  ;;  %v301_v58 = vpack.c.bf16 %v864_v54, %v864_v54 }
 0x136   :  { %299 = vst [vmem:[#allocation10 + $0x8] sm:$0xff] %v866_v55  ;;  %v302_v56 = vpack.c.bf16 %v866_v55, %v866_v55 }
 0x138   :  { %486 = vmatprep.mubr.bf16.mxu0 %v302_v56 }
 0x139   :  { %487 = vmatmul.mubr.bf16.vlgmr.msra.gmra.mrb[0].mxu0 %v301_v58 }
 0x13a   :  { %790 = vmatpush3.bf16.msra.mxu0 %v855_v57  ;;  %805 = vmatprep.mubr.msk.bf16.mxu0 %vm1045_vm1, %v1044_v11 }
 0x13b   :  { %791 = vmatprep.subr.bf16.mxu0 %v1044_v11 }
 0x13c   :  { %v868_v60 = vpop.eup %867 }
 0x13d   :  { %300 = vst [vmem:[#allocation10 + $0x10] sm:$0xff] %v868_v60  ;;  %v303_v61 = vpack.c.bf16 %v868_v60, %v868_v60 }
 0x13e   :  { %792 = vmatpush3.bf16.msra.mxu0 %v856_v59 }
 0x13f   :  { %786 = vmatmul.mubr.bf16.vlgmr.msra.gmra.mrb[8].mxu1 %v303_v61  ;;  %793 = vmatprep.subr.bf16.mxu0 %v1044_v11 }
 0x142   :  { %794 = vmatpush3.bf16.msra.mxu0 %v857_v62 }
 0x143   :  { %795 = vmatprep.subr.bf16.mxu0 %v1044_v11 }
 0x146   :  { %796 = vmatpush3.bf16.msra.mxu0 %v858_v63 }
 0x147   :  { %797 = vmatprep.subr.bf16.mxu0 %v1044_v11 }
 0x14a   :  { %798 = vmatpush3.bf16.msra.mxu0 %v859_v0 }
 0x14b   :  { %799 = vmatprep.subr.bf16.mxu0 %v1044_v11 }
 0x14e   :  { %800 = vmatpush3.bf16.msra.mxu0 %v860_v1 }
 0x14f   :  { %801 = vmatprep.subr.bf16.mxu0 %v1044_v11 }
 0x152   :  { %802 = vmatpush3.bf16.msra.mxu0 %v861_v2 }
 0x153   :  { %803 = vmatprep.subr.bf16.mxu0 %v1044_v11 }
 0x156   :  { %804 = vmatpush3.bf16.msra.mxu0 %v862_v3 }
 0x20c   :  { %v737_v4 = vpop.f32.mrb[0].mxu0 }
 0x20d   :  { %v738_v5 = vpop.f32.mrb[1].mxu0 }
 0x20e   :  { %v739_v7 = vadd.f32 %v738_v5, %v737_v4  ;;  %v740_v8 = vpop.f32.mrb[2].mxu0 }
 0x20f   :  { %v741_v9 = vpop.f32.mrb[3].mxu0 }
 0x210   :  { %v489_v10 = vadd.f32 %v739_v7, %v684_v6 }
 0x212   :  { %v528_v12 = vpop.f32.mrb[8].mxu1 }
 0x213   :  { %v529_v13 = vadd.f32 %v528_v12, %v489_v10  ;;  %v787_v14 = vpop.f32.mrb[9].mxu1 }
 0x214   :  { %v531_v15 = vpop.f32.mrb[10].mxu1 }
 0x215   :  { %869 = vtanh.f32 %v529_v13  ;;  %v788_v16 = vpop.f32.mrb[11].mxu1 }
 0x21f   :  { %v870_v17 = vpop.eup %869 }
 0x220   :  { %535 = vst [vmem:[#allocation11] sm:$0xff] %v870_v17  ;;  %v536_v11 = vpack.c.bf16 %v870_v17, %v870_v17 }
 0x222   :  { %806 = vmatmul.mubr.bf16.vlgmr.msra.gmra.mrb[4].mxu0 %v536_v11 }
 0x223   :  { %970 = shalt.err (!%p967_p8)
}
 0x224   :  { %s971_s0 = scalar_lea.hbm %s1226_s8, 128 }
 0x225   :  { %p972_p9 = scmp.ne.s32.totalorder %s1226_s8, %s971_s0  ;;  %p975_p10 = scmp.lt.u32.totalorder %s971_s0, %s1226_s8 }
 0x227   :  { %p977_p11 = pnand %p975_p10, %p972_p9 }
 0x229   :  { %980 = shalt.err (!%p977_p11)
}
 0x22a   :  { %651 = dma.vmem_to_hbm [thread:$0]  %s649_s18, 128, %s1226_s8, [#allocation12]  }
 0x22b   :  { %s981_s30 = scalar_lea.vmem %s639_s20, 384  ;;  %p986_p13 = scmp.lt.s32.totalorder %s639_s20, %s639_s20 }
 0x22c   :  { %p982_p12 = scmp.ne.s32.totalorder %s639_s20, %s981_s30  ;;  %p987_p0 = scmp.lt.s32.totalorder %s981_s30, %s981_s30 }
 0x22e   :  { %p988_p1 = por %p987_p0, %p986_p13 }
 0x230   :  { %p989_p2 = pnand %p988_p1, %p982_p12 }
 0x232   :  { %992 = shalt.err (!%p989_p2)
}
 0x233   :  { %s993_s13 = scalar_lea.hbm %s1225_s7, 384 }
 0x234   :  { %p994_p3 = scmp.ne.s32.totalorder %s1225_s7, %s993_s13  ;;  %p997_p4 = scmp.lt.u32.totalorder %s993_s13, %s1225_s7 }
 0x236   :  { %p999_p5 = pnand %p997_p4, %p994_p3 }
 0x238   :  { %1002 = shalt.err (!%p999_p5)
}
 0x239   :  { %641 = dma.vmem_to_hbm [thread:$0]  %s639_s20, 384, %s1225_s7, [#allocation4]   ;;  %v709_v18 = vld [vmem:[%s1224_s6] ss:$0 sm:$0xff] }
 0x23a   :  { %s1048_s2 = smov [#allocation13]  }
 0x23b   :  { %s658_s16 = sshll.u32 %s1048_s2, 4  ;;  %s659_s16 = int_to_ptr.vmem [resolvable:$true] %s658_s16 }
 0x23c   :  { %s1003_s17 = scalar_lea.vmem %s659_s16, 128  ;;  %p1008_p7 = scmp.lt.s32.totalorder %s659_s16, %s659_s16 }
 0x23d   :  { %p1004_p6 = scmp.ne.s32.totalorder %s659_s16, %s1003_s17  ;;  %p1009_p8 = scmp.lt.s32.totalorder %s1003_s17, %s1003_s17 }
 0x23f   :  { %p1010_p9 = por %p1009_p8, %p1008_p7 }
 0x241   :  { %p1011_p10 = pnand %p1010_p9, %p1004_p6 }
 0x2f5   :  { %v625_v19 = vpop.f32.mrb[4].mxu0 }
 0x2f6   :  { %v626_v20 = vadd.f32 %v709_v18, %v625_v19  ;;  %v807_v21 = vpop.f32.mrb[5].mxu0 }
 0x2f7   :  { %v628_v22 = vpop.f32.mrb[6].mxu0 }
 0x2f8   :  { %631 = vst [vmem:[#allocation13] sm:$0xff] %v626_v20  ;;  %v808_v23 = vpop.f32.mrb[7].mxu0 }
 0x2f9   :  { %1014 = shalt.err (!%p1011_p10)
}
 0x2fa   :  { %s1015_s6 = scalar_lea.hbm %s1227_s9, 128 }
 0x2fb   :  { %p1016_p11 = scmp.ne.s32.totalorder %s1227_s9, %s1015_s6  ;;  %p1019_p12 = scmp.lt.u32.totalorder %s1015_s6, %s1227_s9 }
 0x2fd   :  { %p1021_p13 = pnand %p1019_p12, %p1016_p11 }
 0x2ff   :  { %1024 = shalt.err (!%p1021_p13)
}
 0x300   :  { %661 = dma.vmem_to_hbm [thread:$0]  %s659_s16, 128, %s1227_s9, [#allocation12]  }
 0x301   :  { %1031 = dma.done.wait [#allocation4], 384  }
 0x302   :  { %1032 = vsyncadd [#allocation4], 4294966912 }
 0x303   :  { %1033 = dma.done.wait [#allocation12], 256  }
 0x304   :  { %1034 = vsyncadd [#allocation12], 4294967040 }
 0x305   :  { %671 = vsyncpa [#allocation3], 1 }
 0x306   :  { %672 = vsyncpa [#allocation6], 1 }
 0x307   :  { %673 = vsyncpa [#allocation9], 1 }
 0x308   :  { %674 = vsyncpa [#allocation4], 1 }
 0x309   :  { %675 = vsyncpa [#allocation12], 1 }

</bundles_post_ra>
